<compile_context>
chip_gen: v7x
topology: tpu7x:2x2x1
jax: 0.10.0
libtpu: 0.0.40
codegen_flags: <defaults>
</compile_context>

<pallas_src>
import functools

import jax
import jax.numpy as jnp
from jax import lax
from jax.experimental import pallas as pl
from jax.experimental.pallas import tpu as pltpu


def _cmm_kernel(pred_ref, gt_ref, acc_ref, *,
                threshold, rows_total, rows_per_block, ni, needs_mask):
    # pred_ref / gt_ref: (1, TR, 128) input tiles (any numeric dtype; cast here).
    # acc_ref: (1, 3, 128) f32 per-lane accumulator, resident in VMEM across the
    # inner (reduction) grid axis.  Row 0: sum of -BCE (negated in the glue),
    # row 1: sum(pred_bin * gt), row 2: sum(pred_bin + gt).
    i = pl.program_id(2)

    @pl.when(i == 0)
    def _init():
        acc_ref[...] = jnp.zeros_like(acc_ref)

    # Cast to f32 in-kernel: keeps HBM reads narrow and avoids bf16 VPU/EUP
    # issues on v5e.
    p = pred_ref[...].astype(jnp.float32)
    t = gt_ref[...].astype(jnp.float32)

    # Binary cross entropy, logs clamped at -100 like F.binary_cross_entropy.
    # Written as t*(log_p - log_1mp) + log_1mp (== -BCE); the negation is folded
    # into the host-side glue so it is not paid per element.
    log_p = jnp.maximum(jnp.log(p), -100.0)
    log_1mp = jnp.maximum(jnp.log(1.0 - p), -100.0)
    nbce = t * (log_p - log_1mp) + log_1mp

    # Dice statistics on the thresholded prediction (pred_bin in {0, 1}):
    #   inter = pred_bin * t,  tot = pred_bin + t   (select instead of cast/mul).
    mask = p > threshold
    inter = jnp.where(mask, t, 0.0)
    tot = jnp.where(mask, t + 1.0, t)

    if needs_mask:
        # Tail tile: zero out rows past the end of the sample.  Applied with
        # selects so NaN/Inf from the unspecified padded region cannot leak in.
        o = pl.program_id(1)
        rows_left = rows_total - (o * ni + i) * rows_per_block
        row_idx = lax.broadcasted_iota(jnp.int32, p.shape, dimension=1)
        valid = row_idx < rows_left
        nbce = jnp.where(valid, nbce, 0.0)
        inter = jnp.where(valid, inter, 0.0)
        tot = jnp.where(valid, tot, 0.0)

    # Per-lane partial sums (sublane reduction only); accumulate in f32 into the
    # single merged output block.
    acc_ref[:, 0:1, :] += jnp.sum(nbce, axis=1, keepdims=True)
    acc_ref[:, 1:2, :] += jnp.sum(inter, axis=1, keepdims=True)
    acc_ref[:, 2:3, :] += jnp.sum(tot, axis=1, keepdims=True)


def cmm_loss_base(pred, gt, *, threshold=0.5, weight_ce=1.0, weight_dice=1.0,
                  rows_per_block=2048):
    """Pallas implementation of CMMLossBase.forward(pred, gt).

    pred: probabilities in (0, 1), shape (B, C, H, W), any float dtype
          (f32 / bf16 -- kept narrow in HBM, upcast in-kernel).
    gt:   mask, shape (B, C, H, W), any numeric dtype (f32 / uint8 / bool).
    """
    assert pred.ndim == 4, "expect NCHW"
    assert pred.shape == gt.shape, "pred and gt must have the same shape"
    B, C, H, W = pred.shape
    feat = C * H * W
    # TODO(synk): shapes with C*H*W % 128 != 0 would need a padded layout.
    assert feat % 128 == 0, "C*H*W must be a multiple of 128 for this tiling"
    R = feat // 128

    # Fixed tile size: big (>= 1 MiB f32 block) for HBM efficiency, multiple of
    # 32 rows so bf16/int8 packed sublane tiles stay aligned.  Tail handled by
    # in-kernel masking, so any R works without VMEM blowup.
    if R <= rows_per_block:
        TR = R                       # whole sample in one tile
    else:
        TR = max(32, (int(rows_per_block) // 32) * 32)
    NC = -(-R // TR)                 # number of reduction chunks per sample
    needs_mask = (R % TR) != 0

    # Megacore split: make B*NO even whenever possible so both v7x TensorCores
    # get work (no-op on single-core v5e/v6e).
    NO = 2 if (B % 2 == 1 and NC % 2 == 0) else 1
    NI = NC // NO

    # Pure reshape -- no dtype cast, narrow dtypes stay narrow in HBM.
    pred3 = pred.reshape(B, R, 128)
    gt3 = gt.reshape(B, R, 128)

    in_map = lambda b, o, i: (b, o * NI + i, 0)
    out_map = lambda b, o, i: (b * NO + o, 0, 0)   # constant across inner axis

    # Triple-buffer the inputs only when the reduction actually has >= 2 steps.
    if NI >= 2:
        in_spec = pl.BlockSpec((1, TR, 128), in_map, pipeline_mode=pl.Buffered(3))
        n_in_buf = 3
    else:
        in_spec = pl.BlockSpec((1, TR, 128), in_map)
        n_in_buf = 2

    # Explicit VMEM budget: n_buf x (pred block + gt block) + margin, capped at
    # 48 MiB so it can never exceed v7x's 64 MiB physical VMEM per TensorCore.
    block_elems = TR * 128
    in_buf_bytes = n_in_buf * block_elems * (pred.dtype.itemsize + gt.dtype.itemsize)
    vmem_limit = int(min(48 << 20, max(in_buf_bytes + (4 << 20), 16 << 20)))

    # Advisory cost estimate so XLA schedules surrounding ops sensibly.
    n_elem = B * feat
    cost = pl.CostEstimate(
        flops=14 * n_elem,
        transcendentals=2 * n_elem,
        bytes_accessed=n_elem * (pred.dtype.itemsize + gt.dtype.itemsize)
        + B * NO * 3 * 128 * 4,
    )

    kernel = functools.partial(
        _cmm_kernel,
        threshold=float(threshold),
        rows_total=R,
        rows_per_block=TR,
        ni=NI,
        needs_mask=needs_mask,
    )

    partials = pl.pallas_call(
        kernel,
        grid=(B, NO, NI),
        in_specs=[in_spec, in_spec],
        out_specs=pl.BlockSpec((1, 3, 128), out_map),
        out_shape=jax.ShapeDtypeStruct((B * NO, 3, 128), jnp.float32),
        compiler_params=pltpu.CompilerParams(
            dimension_semantics=("parallel", "parallel", "arbitrary"),
            vmem_limit_bytes=vmem_limit,
        ),
        cost_estimate=cost,
    )(pred3, gt3)

    # Tiny JAX glue: finish the cross-lane / cross-chunk sums and combine.
    per_b = jnp.sum(partials.reshape(B, NO, 3, 128), axis=(1, 3))   # (B, 3)
    nbce_b, inter_b, tot_b = per_b[:, 0], per_b[:, 1], per_b[:, 2]

    # ce_loss = mean over all elements (sign of the BCE restored here).
    ce_loss = -jnp.sum(nbce_b) / jnp.float32(B * feat)

    # dice_loss = mean over batch of (1 - (2*I + 1) / (T + 1)), with the
    # thresholded prediction in both numerator and denominator (matches the
    # PyTorch module, which passes predicted_binary to dice_loss).
    smooth = 1.0
    dice_loss = jnp.mean(1.0 - (2.0 * inter_b + smooth) / (tot_b + smooth))

    return weight_ce * ce_loss + weight_dice * dice_loss


def _reference(pred, gt, *, threshold=0.5, weight_ce=1.0, weight_dice=1.0):
    """Pure-JAX reference mirroring the PyTorch forward, for sanity checking."""
    p = pred.astype(jnp.float32)
    t = gt.astype(jnp.float32)
    log_p = jnp.maximum(jnp.log(p), -100.0)
    log_1mp = jnp.maximum(jnp.log(1.0 - p), -100.0)
    ce = jnp.mean(-(t * log_p + (1.0 - t) * log_1mp))
    pb = (p > threshold).astype(jnp.float32)
    inter = jnp.sum(pb * t, axis=(1, 2, 3))
    tot = jnp.sum(pb, axis=(1, 2, 3)) + jnp.sum(t, axis=(1, 2, 3))
    dice = jnp.mean(1.0 - (2.0 * inter + 1.0) / (tot + 1.0))
    return weight_ce * ce + weight_dice * dice


if __name__ == "__main__":
    key = jax.random.PRNGKey(0)
    k1, k2, k3, k4, k5, k6 = jax.random.split(key, 6)

    # --- Test 1: small f32 case (single block per sample), default threshold.
    B, C, H, W = 2, 4, 16, 16
    pred = jax.random.uniform(k1, (B, C, H, W), jnp.float32,
                              minval=0.01, maxval=0.99)
    gt = jax.random.bernoulli(k2, p=0.4, shape=(B, C, H, W)).astype(jnp.float32)

    loss = jax.block_until_ready(cmm_loss_base(pred, gt, threshold=0.5))
    ref = _reference(pred, gt, threshold=0.5)
    assert jnp.allclose(loss, ref, rtol=1e-5, atol=1e-5), (loss, ref)

    # Non-default threshold is honored by the kernel.
    loss2 = jax.block_until_ready(cmm_loss_base(pred, gt, threshold=0.3))
    ref2 = _reference(pred, gt, threshold=0.3)
    assert jnp.allclose(loss2, ref2, rtol=1e-5, atol=1e-5), (loss2, ref2)

    # --- Test 2: odd batch + non-divisible chunking (exercises the tail-row
    # mask and the megacore chunk split) with narrow dtypes end-to-end
    # (bf16 pred, uint8 gt).  feat = 5*32*32 = 5120 -> R = 40, TR = 32.
    B2, C2, H2, W2 = 3, 5, 32, 32
    pred_bf = jax.random.uniform(k3, (B2, C2, H2, W2), jnp.float32,
                                 minval=0.01, maxval=0.99).astype(jnp.bfloat16)
    gt_u8 = jax.random.bernoulli(k4, p=0.3, shape=(B2, C2, H2, W2)).astype(jnp.uint8)
    loss3 = jax.block_until_ready(
        cmm_loss_base(pred_bf, gt_u8, threshold=0.5, rows_per_block=32))
    ref3 = _reference(pred_bf.astype(jnp.float32), gt_u8.astype(jnp.float32),
                      threshold=0.5)
    assert jnp.allclose(loss3, ref3, rtol=1e-4, atol=1e-4), (loss3, ref3)

    # --- Test 3: B=1 with a multi-step reduction (exercises the accumulator
    # across the inner axis, the B==1 megacore split and the Buffered(3) path).
    # feat = 8*64*64 = 32768 -> R = 256, TR = 64 -> NC = 4, NO = 2, NI = 2.
    B3, C3, H3, W3 = 1, 8, 64, 64
    pred3_ = jax.random.uniform(k5, (B3, C3, H3, W3), jnp.float32,
                                minval=0.01, maxval=0.99)
    gt3_ = jax.random.bernoulli(k6, p=0.5, shape=(B3, C3, H3, W3)).astype(jnp.float32)
    loss4 = jax.block_until_ready(
        cmm_loss_base(pred3_, gt3_, threshold=0.5, rows_per_block=64))
    ref4 = _reference(pred3_, gt3_, threshold=0.5)
    assert jnp.allclose(loss4, ref4, rtol=1e-5, atol=1e-5), (loss4, ref4)

    print("KERNEL_OK")
</pallas_src>

<mosaic_0001>
module attributes {stable_mosaic.version = 11 : i64} {
  func.func @_cmm_kernel(%arg0: i32, %arg1: i32, %arg2: i32, %arg3: memref<1x8x128xf32, #tpu.memory_space<vmem>>, %arg4: memref<1x8x128xf32, #tpu.memory_space<vmem>>, %arg5: memref<1x3x128xf32, #tpu.memory_space<vmem>>) attributes {dimension_semantics = [#tpu.dimension_semantics<parallel>, #tpu.dimension_semantics<parallel>, #tpu.dimension_semantics<arbitrary>], iteration_bounds = array<i64: 2, 1, 1>, scalar_prefetch = 0 : i64, scratch_operands = 0 : i64, tpu.core_type = #tpu.core_type<tc>, window_params = [{transform_indices = @transform_0, window_bounds = array<i64: 1, 8, 128>}, {transform_indices = @transform_1, window_bounds = array<i64: 1, 8, 128>}, {transform_indices = @transform_2, window_bounds = array<i64: 1, 3, 128>}]} {
    %c0_i32 = arith.constant 0 : i32
    %0 = arith.cmpi eq, %arg2, %c0_i32 : i32
    %1 = arith.extui %0 : i1 to i32
    %c0_i32_0 = arith.constant 0 : i32
    %2 = arith.cmpi ne, %1, %c0_i32_0 : i32
    scf.if %2 {
      %cst_30 = arith.constant 0.000000e+00 : f32
      %38 = vector.broadcast %cst_30 : f32 to vector<1x3x128xf32>
      %c0_31 = arith.constant 0 : index
      %c0_32 = arith.constant 0 : index
      %c0_33 = arith.constant 0 : index
      %39 = vector.load %arg5[%c0_31, %c0_32, %c0_33] : memref<1x3x128xf32, #tpu.memory_space<vmem>>, vector<1x3x128xf32>
      tpu.vector_store %arg5[%c0_31, %c0_32, %c0_33], %38 {strides = array<i32>} : memref<1x3x128xf32, #tpu.memory_space<vmem>>, vector<1x3x128xf32>,
    } else {
    }
    %c0 = arith.constant 0 : index
    %c0_1 = arith.constant 0 : index
    %c0_2 = arith.constant 0 : index
    %3 = vector.load %arg3[%c0, %c0_1, %c0_2] : memref<1x8x128xf32, #tpu.memory_space<vmem>>, vector<1x8x128xf32>
    %c0_3 = arith.constant 0 : index
    %c0_4 = arith.constant 0 : index
    %c0_5 = arith.constant 0 : index
    %4 = vector.load %arg4[%c0_3, %c0_4, %c0_5] : memref<1x8x128xf32, #tpu.memory_space<vmem>>, vector<1x8x128xf32>
    %5 = math.log %3 : vector<1x8x128xf32>
    %cst = arith.constant -1.000000e+02 : f32
    %6 = vector.broadcast %cst : f32 to vector<1x8x128xf32>
    %7 = arith.maximumf %5, %6 : vector<1x8x128xf32>
    %cst_6 = arith.constant 1.000000e+00 : f32
    %8 = vector.broadcast %cst_6 : f32 to vector<1x8x128xf32>
    %9 = arith.subf %8, %3 : vector<1x8x128xf32>
    %10 = math.log %9 : vector<1x8x128xf32>
    %cst_7 = arith.constant -1.000000e+02 : f32
    %11 = vector.broadcast %cst_7 : f32 to vector<1x8x128xf32>
    %12 = arith.maximumf %10, %11 : vector<1x8x128xf32>
    %13 = arith.subf %7, %12 : vector<1x8x128xf32>
    %14 = arith.mulf %4, %13 : vector<1x8x128xf32>
    %15 = arith.addf %14, %12 : vector<1x8x128xf32>
    %cst_8 = arith.constant 5.000000e-01 : f32
    %16 = vector.broadcast %cst_8 : f32 to vector<1x8x128xf32>
    %17 = arith.cmpf ogt, %3, %16 : vector<1x8x128xf32>
    %cst_9 = arith.constant 0.000000e+00 : f32
    %18 = vector.broadcast %cst_9 : f32 to vector<1x8x128xf32>
    %19 = arith.select %17, %4, %18 : vector<1x8x128xi1>, vector<1x8x128xf32>
    %cst_10 = arith.constant 1.000000e+00 : f32
    %20 = vector.broadcast %cst_10 : f32 to vector<1x8x128xf32>
    %21 = arith.addf %4, %20 : vector<1x8x128xf32>
    %22 = arith.select %17, %21, %4 : vector<1x8x128xi1>, vector<1x8x128xf32>
    %c0_11 = arith.constant 0 : index
    %c0_12 = arith.constant 0 : index
    %c0_13 = arith.constant 0 : index
    %23 = vector.load %arg5[%c0_11, %c0_12, %c0_13] : memref<1x3x128xf32, #tpu.memory_space<vmem>>, vector<1x1x128xf32>
    %cst_14 = arith.constant dense<0.000000e+00> : vector<1x128xf32>
    %24 = vector.multi_reduction <add>, %15, %cst_14 [1] : vector<1x8x128xf32> to vector<1x128xf32>
    %25 = vector.shape_cast %24 : vector<1x128xf32> to vector<1x1x128xf32>
    %26 = arith.addf %23, %25 : vector<1x1x128xf32>
    %c0_15 = arith.constant 0 : index
    %c0_16 = arith.constant 0 : index
    %c0_17 = arith.constant 0 : index
    %27 = vector.load %arg5[%c0_15, %c0_16, %c0_17] : memref<1x3x128xf32, #tpu.memory_space<vmem>>, vector<1x1x128xf32>
    tpu.vector_store %arg5[%c0_15, %c0_16, %c0_17], %26 {strides = array<i32>} : memref<1x3x128xf32, #tpu.memory_space<vmem>>, vector<1x1x128xf32>,
    %c0_18 = arith.constant 0 : index
    %c1 = arith.constant 1 : index
    %c0_19 = arith.constant 0 : index
    %28 = vector.load %arg5[%c0_18, %c1, %c0_19] : memref<1x3x128xf32, #tpu.memory_space<vmem>>, vector<1x1x128xf32>
    %cst_20 = arith.constant dense<0.000000e+00> : vector<1x128xf32>
    %29 = vector.multi_reduction <add>, %19, %cst_20 [1] : vector<1x8x128xf32> to vector<1x128xf32>
    %30 = vector.shape_cast %29 : vector<1x128xf32> to vector<1x1x128xf32>
    %31 = arith.addf %28, %30 : vector<1x1x128xf32>
    %c0_21 = arith.constant 0 : index
    %c1_22 = arith.constant 1 : index
    %c0_23 = arith.constant 0 : index
    %32 = vector.load %arg5[%c0_21, %c1_22, %c0_23] : memref<1x3x128xf32, #tpu.memory_space<vmem>>, vector<1x1x128xf32>
    tpu.vector_store %arg5[%c0_21, %c1_22, %c0_23], %31 {strides = array<i32>} : memref<1x3x128xf32, #tpu.memory_space<vmem>>, vector<1x1x128xf32>,
    %c0_24 = arith.constant 0 : index
    %c2 = arith.constant 2 : index
    %c0_25 = arith.constant 0 : index
    %33 = vector.load %arg5[%c0_24, %c2, %c0_25] : memref<1x3x128xf32, #tpu.memory_space<vmem>>, vector<1x1x128xf32>
    %cst_26 = arith.constant dense<0.000000e+00> : vector<1x128xf32>
    %34 = vector.multi_reduction <add>, %22, %cst_26 [1] : vector<1x8x128xf32> to vector<1x128xf32>
    %35 = vector.shape_cast %34 : vector<1x128xf32> to vector<1x1x128xf32>
    %36 = arith.addf %33, %35 : vector<1x1x128xf32>
    %c0_27 = arith.constant 0 : index
    %c2_28 = arith.constant 2 : index
    %c0_29 = arith.constant 0 : index
    %37 = vector.load %arg5[%c0_27, %c2_28, %c0_29] : memref<1x3x128xf32, #tpu.memory_space<vmem>>, vector<1x1x128xf32>
    tpu.vector_store %arg5[%c0_27, %c2_28, %c0_29], %36 {strides = array<i32>} : memref<1x3x128xf32, #tpu.memory_space<vmem>>, vector<1x1x128xf32>,
    return
  }
  func.func @transform_0(%arg0: i32, %arg1: i32, %arg2: i32) -> (i32, i32, i32) {
    %c1_i32 = arith.constant 1 : i32
    %0 = arith.muli %arg1, %c1_i32 : i32
    %1 = arith.addi %0, %arg2 : i32
    %c0_i32 = arith.constant 0 : i32
    %c0_i32_0 = arith.constant 0 : i32
    return %arg0, %1, %c0_i32 : i32, i32, i32
  }
  func.func @transform_1(%arg0: i32, %arg1: i32, %arg2: i32) -> (i32, i32, i32) {
    %c1_i32 = arith.constant 1 : i32
    %0 = arith.muli %arg1, %c1_i32 : i32
    %1 = arith.addi %0, %arg2 : i32
    %c0_i32 = arith.constant 0 : i32
    %c0_i32_0 = arith.constant 0 : i32
    return %arg0, %1, %c0_i32 : i32, i32, i32
  }
  func.func @transform_2(%arg0: i32, %arg1: i32, %arg2: i32) -> (i32, i32, i32) {
    %c1_i32 = arith.constant 1 : i32
    %0 = arith.muli %arg0, %c1_i32 : i32
    %1 = arith.addi %0, %arg1 : i32
    %c0_i32 = arith.constant 0 : i32
    %c0_i32_0 = arith.constant 0 : i32
    %c0_i32_1 = arith.constant 0 : i32
    return %1, %c0_i32, %c0_i32_0 : i32, i32, i32
  }
}

</mosaic_0001>

<bundles_post_ra>
// kernel: tpu_custom_call.1
= control target key start
LH: loop header
LB: loop body
LE: loop exit
PB: predicated region body
PF: predicated region fallthrough
CT: control target
= control target key end

     0   :  { %7 = vsyncpa [#allocation3], 0  ;;  %s782_s0 = inlined_call_operand.hbm [shape: f32[2,8,128], index: 0, kind: input, shape index: {}]   ;;  %s783_s1 = inlined_call_operand.hbm [shape: f32[2,8,128], index: 1, kind: input, shape index: {}]   ;;  %s784_s2 = inlined_call_operand.vmem [shape: f32[2,3,128], index: 2, kind: output, shape index: {}]  }
   0x1   :  { %9 = vsyncpa [#allocation3 + $0x1], 0 }
   0x2   :  { %10 = vsyncpa [#allocation5], 0 }
   0x3   :  { %12 = vsyncpa [#allocation5 + $0x1], 0  ;;  %s601_s9 = smov 0   ;;  %s603_s10 = smov 0  }
   0x4   :  { %s605_s11 = smov 0   ;;  %s607_s12 = smov 0  }
   0x5   :  { %s609_s13 = smov 0   ;;  %s611_s14 = smov 0  }
   0x6 LB: > { %s388_s15 = sadd.s32 4294967295, %s581_s14   ;;  %s37_s16 = sadd.s32 1, %s577_s13  ;;  %s581_s14 = sphi %s611_s14, %s18_s14   ;;  %s577_s13 = sphi %s609_s13, %s798_s13   ;;  %s573_s12 = sphi %s607_s12, %s797_s12   ;;  %s569_s11 = sphi %s605_s11, %s796_s11   ;;  %s565_s10 = sphi %s603_s10, %s795_s10   ;;  %s561_s9 = sphi %s601_s9, %s794_s9  }
   0x7   : > { %p39_p0 = scmp.ge.s32.totalorder %s37_s16, 2  ;;  %s48_s17 = sadd.s32 1, %s569_s11 }
   0x8   : > { %p55_p1 = scmp.ne.s32.totalorder %s569_s11, %s565_s10  ;;  %p56_p2 = scmp.eq.s32.totalorder %s581_s14, 0 }
   0x9   : > { %s800_s16 = smov (%p39_p0, %s37_s16), 0  ;;  %p61_p4 = scmp.ne.s32.totalorder %s565_s10, %s561_s9 }
   0xa   : > { %p637_p3 = por %p56_p2, %p55_p1  ;;  %s43_s19 = ssub.s32 %s577_s13, %s800_s16 }
   0xb   : > { %p62_p5 = scmp.eq.s32.totalorder %s388_s15, 0  ;;  %p46_p6 = scmp.eq.s32.totalorder %s43_s19, 0 }
   0xc   : > { %p413_p8 = scmp.lt.s32.totalorder %s581_s14, 2  ;;  %s653_s22 = sand.u32 1, %s569_s11  }
   0xd   : > { %p644_p7 = por %p62_p5, %p61_p4  ;;  %s393_s23 = sshll.u32 %s577_s13, 7 }
   0xe   : > { %s650_s21 = scalar_select %p46_p6, %s569_s11, %s48_s17  }
   0xf   : > { %s787_s20 = scalar_select %p644_p7, 1, 0 }
  0x10   : > { %s392_s24 = sshll.u32 %s653_s22, 3  ;;  %s662_s27 = scalar_lea.hbm %s782_s0, %s393_s23 }
  0x11   : > { %s147_s28 = scalar_lea.vmem [#allocation2], %s392_s24  ;;  %p668_p9 = pnand %p413_p8, %p637_p3 }
  0x12   : > { %s156_s29 = sshll.u32 %s147_s28, 4  ;;  %s144_s3 = scalar_lea.sflag [#allocation3], %s653_s22  ;;  %s672_s29 = int_to_ptr.vmem [resolvable:$true] %s156_s29 }
  0x13   : > { %s467_s4 = scalar_lea.hbm %s662_s27, 128  ;;  %p469_p13 = pneg %p668_p9 }
  0x14   : > { %p468_p12 = scmp.ne.s32.totalorder %s662_s27, %s467_s4  ;;  %s472_s7 = scalar_lea.hbm %s782_s0, 256 }
  0x15   : > { %p473_p2 = scmp.lt.u32.totalorder %s662_s27, %s782_s0  ;;  %p474_p3 = scmp.lt.u32.totalorder %s472_s7, %s467_s4 }
  0x16   : > { %p470_p0 = pnand %p469_p13, %p468_p12  ;;  %p476_p5 = scmp.lt.u32.totalorder %s467_s4, %s662_s27 }
  0x17   : > { %p475_p4 = por %p474_p3, %p473_p2 }
  0x18   : > { %p471_p1 = pneg %p470_p0 }
  0x19   : > { %p477_p6 = por %p476_p5, %p475_p4 }
  0x1b   : > { %p478_p8 = pnand %p477_p6, %p471_p1 }
  0x1d   : > { %481 = shalt.err (!%p478_p8)
}
  0x1e   : > { %s482_s15 = scalar_lea.vmem %s672_s29, 128  ;;  %s583_s17 = smov [#allocation2]  }
  0x1f   : > { %p483_p12 = scmp.ne.s32.totalorder %s672_s29, %s482_s15  ;;  %s487_s18 = sshll.u32 %s583_s17, 4  ;;  %s488_s18 = int_to_ptr.vmem [resolvable:$false] %s487_s18 }
  0x20   : > { %s489_s19 = scalar_lea.vmem %s488_s18, 256  ;;  %p490_p11 = scmp.lt.s32.totalorder %s672_s29, %s488_s18 }
  0x21   : > { %p485_p0 = pnand %p483_p12, %p469_p13  ;;  %p491_p2 = scmp.lt.s32.totalorder %s489_s19, %s482_s15 }
  0x23   : > { %p486_p10 = pneg %p485_p0  ;;  %p492_p3 = por %p491_p2, %p490_p11 }
  0x25   : > { %p493_p4 = pnand %p492_p3, %p486_p10 }
  0x27   : > { %496 = shalt.err (!%p493_p4)
}
  0x28   : > { %409 = dma.hbm_to_vmem [thread:$0]  (!%p668_p9), %s662_s27, 128, %s672_s29, %s144_s3  }
  0x29   : > { %p789_p1 = scmp.lt.s32.totalorder %s581_s14, 3  ;;  %p790_p5 = scmp.ge.s32.totalorder %s581_s14, 1 }
  0x2a   : > { %s715_s4 = scalar_lea.hbm %s783_s1, %s393_s23  ;;  %s167_s5 = scalar_lea.vmem [#allocation4], %s392_s24 }
  0x2b   : > { %p706_p6 = pnand %p790_p5, %p789_p1  ;;  %s176_s6 = sshll.u32 %s167_s5, 4  ;;  %s177_s6 = int_to_ptr.vmem [resolvable:$true] %s176_s6 }
  0x2c   : > { %s164_s27 = scalar_lea.sflag [#allocation5], %s653_s22  ;;  %s497_s29 = scalar_lea.hbm %s715_s4, 128 }
  0x2d   : > { %s791_s25 = scalar_select %p706_p6, 1, 0 }
  0x2e   : > { %p498_p10 = scmp.ne.s32.totalorder %s715_s4, %s497_s29  ;;  %s502_s23 = scalar_lea.hbm %s783_s1, 256 }
  0x2f   : > { %p503_p12 = scmp.lt.u32.totalorder %s715_s4, %s783_s1  ;;  %p504_p0 = scmp.lt.u32.totalorder %s502_s23, %s497_s29 }
  0x30   : > { %p500_p11 = pnand %p498_p10, %p469_p13  ;;  %p506_p3 = scmp.lt.u32.totalorder %s497_s29, %s715_s4 }
  0x31   : > { %p505_p2 = por %p504_p0, %p503_p12 }
  0x32   : > { %p501_p8 = pneg %p500_p11 }
  0x33   : > { %p507_p4 = por %p506_p3, %p505_p2 }
  0x35   : > { %p508_p1 = pnand %p507_p4, %p501_p8 }
  0x37   : > { %511 = shalt.err (!%p508_p1)
}
  0x38   : > { %s512_s22 = scalar_lea.vmem %s177_s6, 128  ;;  %s584_s24 = smov [#allocation4]  }
  0x39   : > { %p513_p5 = scmp.ne.s32.totalorder %s177_s6, %s512_s22  ;;  %s517_s15 = sshll.u32 %s584_s24, 4  ;;  %s518_s15 = int_to_ptr.vmem [resolvable:$false] %s517_s15 }
  0x3a   : > { %s519_s17 = scalar_lea.vmem %s518_s15, 256  ;;  %p520_p7 = scmp.lt.s32.totalorder %s177_s6, %s518_s15 }
  0x3b   : > { %p515_p10 = pnand %p513_p5, %p469_p13  ;;  %p521_p6 = scmp.lt.s32.totalorder %s519_s17, %s512_s22 }
  0x3d   : > { %p516_p11 = pneg %p515_p10  ;;  %p522_p0 = por %p521_p6, %p520_p7 }
  0x3f   : > { %p523_p12 = pnand %p522_p0, %p516_p11 }
  0x41   : > { %526 = shalt.err (!%p523_p12)
}
  0x42   : > { %412 = dma.hbm_to_vmem [thread:$0]  (!%p668_p9), %s715_s4, 128, %s177_s6, %s164_s27  }
  0x43   : > { %p792_p8 = scmp.ne.s32.totalorder %s791_s25, 0 }
  0x44   : > { %s187_s18 = sand.u32 (!%p792_p8), 1, %s565_s10   ;;  %p793_p13 = scmp.ne.s32.totalorder (!%p792_p8), %s787_s20, 0 }
  0x45   : > { %185 = sbr.rel (%p792_p8) target bundleno = 118 (0x76), region = 28  ;;  %s397_s19 = sshll.u32 (!%p792_p8), %s187_s18, 3 }
  0x46   : > { %s188_s26 = scalar_lea.sflag (!%p792_p8), [#allocation3], %s187_s18  ;;  %s191_s28 = scalar_lea.vmem (!%p792_p8), [#allocation2], %s397_s19 }
  0x4c   : > { %552 = dma.done.wait (%p793_p13), %s188_s26, 128  }
  0x4d   : > { %554 = vsyncadd (%p793_p13), %s188_s26, 4294967168  ;;  %s197_s5 = scalar_lea.sflag [#allocation5], %s187_s18  ;;  %s200_s29 = scalar_lea.vmem [#allocation4], %s397_s19 }
  0x4e   : > { %556 = dma.done.wait (%p793_p13), %s197_s5, 128  }
  0x4f   : > { %558 = vsyncadd (%p793_p13), %s197_s5, 4294967168  ;;  %p229_p7 = scmp.lt.s32.totalorder %s573_s12, 1  ;;  %v585_v0 = vmov 0.0   ;;  %v239_v1 = vld [vmem:[%s191_s28] sm:$0xff]  ;;  %v240_v2 = vld [vmem:[%s200_s29] sm:$0xff] }
  0x50   : > { %463 = vlog2.f32 %v239_v1  ;;  %v244_v3 = vsub.f32 1.0, %v239_v1  ;;  %vm251_vm0 = vcmp.gt.f32.partialorder %v239_v1, 0.5  ;;  %v253_v4 = vadd.f32 1.0, %v240_v2 }
  0x51   : > { %s802_s12 = smov (!%p229_p7, %s573_s12), 1  ;;  %v252_v5 = vsel %vm251_vm0, %v240_v2, 0.0 }
  0x52   : > { %s399_s30 = sshll.u32 %s802_s12, 2  ;;  %465 = vlog2.f32 %v244_v3  ;;  %v265_v6 = vrot.slane %v252_v5, 4  ;;  %v254_v7 = vsel %vm251_vm0, %v253_v4, %v240_v2 }
  0x53   : > { %s755_s6 = scalar_lea.vmem %s784_s2, %s399_s30  ;;  %v274_v8 = vrot.slane %v254_v7, 4 }
  0x54   : > { %238 = vst [vmem:[%s755_s6] sm:$0x7] %v585_v0  ;;  %v266_v9 = vadd.f32 %v265_v6, %v252_v5 }
  0x55   : > { %v275_v10 = vadd.f32 %v274_v8, %v254_v7 }
  0x56   : > { %v267_v11 = vrot.slane %v266_v9, 2 }
  0x57   : > { %v276_v12 = vrot.slane %v275_v10, 2 }
  0x58   : > { %v268_v13 = vadd.f32 %v267_v11, %v266_v9 }
  0x59   : > { %v277_v14 = vadd.f32 %v276_v12, %v275_v10 }
  0x5a   : > { %v464_v15 = vpop.eup %463  ;;  %v269_v16 = vrot.slane %v268_v13, 1 }
  0x5b   : > { %v242_v17 = vmul.f32 0.6931472, %v464_v15  ;;  %v264_v18 = vld [vmem:[%s755_s6 + $0x1] sm:$0x1]  ;;  %v278_v19 = vrot.slane %v277_v14, 1 }
  0x5c   : > { %v466_v20 = vpop.eup %465  ;;  %v270_v21 = vadd.f32 %v269_v16, %v268_v13  ;;  %v273_v22 = vld [vmem:[%s755_s6 + $0x2] sm:$0x1]  ;;  %v255_v37 = vld [vmem:[%s755_s6] sm:$0x1] }
  0x5d   : > { %v243_v23 = vmax.f32 %v242_v17, -100.0  ;;  %v246_v24 = vmul.f32 0.6931472, %v466_v20  ;;  %v279_v25 = vadd.f32 %v278_v19, %v277_v14 }
  0x5e   : > { %v271_v26 = vadd.f32 %v270_v21, %v264_v18 }
  0x5f   : > { %v247_v27 = vmax.f32 %v246_v24, -100.0  ;;  %v280_v28 = vadd.f32 %v279_v25, %v273_v22 }
  0x60   : > { %272 = vst [vmem:[%s755_s6 + $0x1] sm:$0x1] %v271_v26 }
  0x61   : > { %v248_v29 = vsub.f32 %v243_v23, %v247_v27  ;;  %281 = vst [vmem:[%s755_s6 + $0x2] sm:$0x1] %v280_v28 }
  0x63   : > { %v249_v30 = vmul.f32 %v248_v29, %v240_v2 }
  0x65   : > { %v250_v31 = vadd.f32 %v249_v30, %v247_v27 }
  0x67   : > { %v256_v32 = vrot.slane %v250_v31, 4 }
  0x69   : > { %v257_v33 = vadd.f32 %v256_v32, %v250_v31 }
  0x6b   : > { %v258_v34 = vrot.slane %v257_v33, 2 }
  0x6d   : > { %v259_v35 = vadd.f32 %v258_v34, %v257_v33 }
  0x6f   : > { %v260_v36 = vrot.slane %v259_v35, 1 }
  0x71   : > { %v261_v38 = vadd.f32 %v260_v36, %v259_v35 }
  0x73   : > { %v262_v39 = vadd.f32 %v261_v38, %v255_v37 }
  0x75   : > { %263 = vst [vmem:[%s755_s6] sm:$0x1] %v262_v39 }
  0x76 PF: > { %s18_s14 = sadd.s32 1, %s581_s14   ;;  %s794_s9 = smov %s565_s10 }
  0x77   : > { %p15_p9 = scmp.ge.s32.totalorder %s18_s14, 4   ;;  %s795_s10 = smov %s569_s11 }
  0x78   : > { %s796_s11 = smov %s650_s21  ;;  %s797_s12 = smov %s577_s13 }
  0x79   : > { %s798_s13 = smov %s800_s16  ;;  %17 = sbr.rel (!%p15_p9) target bundleno = 6 (0x6), region = 85 }
  0x80   :  { %304 = vsyncpa [#allocation3], 1 }
  0x81   :  { %306 = vsyncpa [#allocation3 + $0x1], 1 }
  0x82   :  { %307 = vsyncpa [#allocation5], 1 }
  0x83   :  { %309 = vsyncpa [#allocation5 + $0x1], 1 }

</bundles_post_ra>
